<compile_context>
chip_gen: v5e
topology: v5e:2x2
jax: 0.10.0
libtpu: 0.0.40
codegen_flags: <defaults>
</compile_context>

<pallas_src>
import numpy as np

import jax
import jax.numpy as jnp
from jax import lax
from jax.experimental import pallas as pl
from jax.experimental.pallas import tpu as pltpu

LANES = 128
MAX_TR = 1024                        # cap on 128-lane rows per grid step
VMEM_BUDGET = 20 * 1024 * 1024       # double-buffered input blocks
VMEM_LIMIT = 32 * 1024 * 1024        # scoped VMEM requested from Mosaic


def _row_tile(dtype):
    """Sublane tile multiple for a dtype (sub-32-bit dtypes pack along sublanes)."""
    return {4: 8, 2: 16, 1: 32}[np.dtype(dtype).itemsize]


def _pick_tr(row_bytes, R, row_tile):
    """Rows of 128 lanes per grid step, budgeted against scoped VMEM."""
    cap = VMEM_BUDGET // (row_bytes * 2)              # x2: double buffering
    cap = max(row_tile, (cap // row_tile) * row_tile)
    tr = min(MAX_TR, cap)
    if R >= tr:
        return tr
    if R >= row_tile:
        return (R // row_tile) * row_tile
    return R                                          # tiny input: full extent


def _pick_sub(tr):
    """Rows per inner-loop step (multiple of the f32 sublane tile when possible)."""
    for s in (64, 32, 16, 8):
        if tr % s == 0:
            return s
    return tr


def _target_dtype(t_dtype, sub):
    """Narrowest lossless dtype used to stream the target from HBM."""
    t_dtype = np.dtype(t_dtype)
    if jnp.issubdtype(t_dtype, jnp.floating):
        return np.dtype(np.float32)
    if t_dtype in (np.dtype(np.bool_), np.dtype(np.int8)) and sub % 32 == 0:
        return np.dtype(np.int8)
    # TODO(synk): int32/int64 label maps could stream as int8/int16 when the
    # caller guarantees labels < 128 / < 32768 (e.g. no 255 ignore-label);
    # kept exact (int32) here to preserve the module's semantics.
    return np.dtype(np.int32)


def _make_kernel(C, R, TR, KPC, OUT_R, SUB, need_mask):
    """grid = (B, CS, KPC); accumulates sum(|argmax_c(score) - target|) per (b, core)."""
    G = TR // SUB

    def kernel(score_ref, target_ref, out_ref):
        # score_ref : (1, C, TR, 128)   native dtype (f32 / bf16 / f16)
        # target_ref: (1, TR, 128)      narrow int / f32
        # out_ref   : (1, 1, OUT_R, 128) f32  (resident across the chunk axis)
        k = pl.program_id(2)

        @pl.when(k == 0)
        def _init():
            out_ref[...] = jnp.zeros_like(out_ref)

        if need_mask:
            # global chunk index (core-split aware); rows >= R must not count.
            kg = pl.program_id(1) * KPC + k
            row_limit = R - kg * TR                                # scalar
            row_iota = lax.broadcasted_iota(jnp.int32, (SUB, LANES), 0)  # hoisted

        def fold(d):                       # (SUB,128) -> (OUT_R,128), VPU adds
            if SUB == OUT_R:
                return d
            acc = d[0:OUT_R]
            for f in range(1, SUB // OUT_R):
                acc = acc + d[f * OUT_R:(f + 1) * OUT_R]
            return acc

        def gbody(g, part):
            base = g * SUB
            if SUB % 8 == 0 and not isinstance(g, int):
                base = pl.multiple_of(base, SUB)
            # fused argmax over the class axis (first-occurrence ties, like torch)
            best_val = score_ref[0, 0, pl.ds(base, SUB), :].astype(jnp.float32)
            best_idx = jnp.zeros((SUB, LANES), jnp.float32)
            for c in range(1, C):
                sc = score_ref[0, c, pl.ds(base, SUB), :].astype(jnp.float32)
                take = sc > best_val
                best_val = jnp.where(take, sc, best_val)
                best_idx = jnp.where(take, jnp.float32(c), best_idx)
            t = target_ref[0, pl.ds(base, SUB), :].astype(jnp.float32)
            d = jnp.abs(best_idx - t)
            if need_mask:
                # zero rows whose global index is past the real extent R
                d = jnp.where(row_iota < (row_limit - base), d, jnp.float32(0.0))
            return part + fold(d)

        part0 = jnp.zeros((OUT_R, LANES), jnp.float32)
        if G == 1:
            part = gbody(0, part0)
        else:
            part = lax.fori_loop(0, G, gbody, part0,
                                 unroll=True if G <= 8 else 4)
        out_ref[0, 0] += part              # one accumulate-store per chunk

    return kernel


@jax.jit
def class_class_loss(inputs, target):
    """Matches Class_class_Loss.forward(inputs, target)."""
    inputs = jnp.asarray(inputs)
    target = jnp.asarray(target)
    B, C, H, W = inputs.shape
    if target.ndim == 2:                   # mirrors the .squeeze(0) usage
        target = target[None]
    assert target.shape == (B, H, W), (
        'predict {} & target {} shape do not match'.format((B, H, W), target.shape))

    HW = H * W
    n_elems = B * HW

    # ---- score stream: keep native dtype, cast per sub-tile inside the kernel
    if inputs.dtype in (np.dtype(np.float32), np.dtype(jnp.bfloat16),
                        np.dtype(np.float16)):
        score = inputs
    else:
        score = inputs.astype(jnp.float32)
    score = score.reshape(B, C, HW)                     # free reshape

    pad = (-HW) % LANES
    if pad:
        # TODO(synk): only taken when H*W % 128 != 0; the pad is one extra copy
        # of the score tensor.  Removing it would require sublane-sparse loads
        # (class axis packed into sublanes), which costs more than it saves.
        # Padded pixels contribute |argmax(0-col) - 0| = 0, so the sum is exact.
        score = jnp.pad(score, ((0, 0), (0, 0), (0, pad)))
    HWp = HW + pad
    R = HWp // LANES

    row_tile = _row_tile(score.dtype)
    row_bytes = (C * np.dtype(score.dtype).itemsize + 4) * LANES
    TR = _pick_tr(row_bytes, R, row_tile)
    SUB = _pick_sub(TR)
    OUT_R = 8 if TR % 8 == 0 else TR

    nchunks = pl.cdiv(R, TR)
    # core split: shard the chunk axis across both TensorCores (v7x) when the
    # batch axis can't do it; no-op on 1-TC chips.
    CS = 2 if (B == 1 and nchunks >= 2) else 1
    KPC = pl.cdiv(nchunks, CS)
    need_mask = (CS * KPC * TR) != R

    # ---- target stream: narrowest lossless dtype, cast to f32 in-kernel
    tgt_dtype = _target_dtype(target.dtype, SUB)
    tgt = target.astype(tgt_dtype).reshape(B, HW)
    if pad:
        tgt = jnp.pad(tgt, ((0, 0), (0, pad)))

    score4 = score.reshape(B, C, R, LANES)              # free reshape
    tgt3 = tgt.reshape(B, R, LANES)                     # free reshape

    if CS * KPC == nchunks:
        def chunk_of(c, k):
            return c * KPC + k
    else:
        def chunk_of(c, k):                             # clamp; extra chunks are masked
            return jnp.minimum(c * KPC + k, nchunks - 1)

    kernel = _make_kernel(C, R, TR, KPC, OUT_R, SUB, need_mask)

    partial = pl.pallas_call(
        kernel,
        out_shape=jax.ShapeDtypeStruct((B, CS, OUT_R, LANES), jnp.float32),
        grid_spec=pltpu.PrefetchScalarGridSpec(
            num_scalar_prefetch=0,
            grid=(B, CS, KPC),
            in_specs=[
                pl.BlockSpec((1, C, TR, LANES),
                             lambda b, c, k: (b, 0, chunk_of(c, k), 0)),
                pl.BlockSpec((1, TR, LANES),
                             lambda b, c, k: (b, chunk_of(c, k), 0)),
            ],
            out_specs=pl.BlockSpec((1, 1, OUT_R, LANES),
                                   lambda b, c, k: (b, c, 0, 0)),
        ),
        compiler_params=pltpu.CompilerParams(
            dimension_semantics=("parallel", "parallel", "arbitrary"),
            vmem_limit_bytes=VMEM_LIMIT),
    )(score4, tgt3)

    return jnp.sum(partial) / jnp.float32(n_elems)


def _loss_ref(inputs, target):
    """Pure-JAX reference mirroring the PyTorch module."""
    pred = jnp.argmax(inputs, axis=1).astype(jnp.float32)
    return jnp.mean(jnp.abs(pred - target.astype(jnp.float32)))


def _check(inputs, target):
    out = jax.block_until_ready(class_class_loss(inputs, target))
    ref = _loss_ref(inputs, target)
    assert jnp.allclose(out, ref, rtol=1e-6, atol=1e-6), (out, ref)
    return out


if __name__ == "__main__":
    key = jax.random.PRNGKey(0)
    k1, k2, k3, k4, k5, k6, k7, k8 = jax.random.split(key, 8)

    # 1) batch=2, channels=4, spatial=16x16 (f32 score, int32 target)
    x1 = jax.random.normal(k1, (2, 4, 16, 16), dtype=jnp.float32)
    t1 = jax.random.randint(k2, (2, 16, 16), 0, 4, dtype=jnp.int32)
    _check(x1, t1)

    # 2) batch=1 with 2-D target (squeeze(0) path); int8 labels -> narrow target stream
    x2 = jax.random.normal(k3, (1, 4, 64, 64), dtype=jnp.float32)
    t2 = jax.random.randint(k4, (64, 64), 0, 4, dtype=jnp.int32).astype(jnp.int8)
    _check(x2, t2)

    # 3) odd class count + ragged chunking (R=18, TR=16) + 2-way core split
    x3 = jax.random.normal(k5, (1, 5, 48, 48), dtype=jnp.float32)
    t3 = jax.random.randint(k6, (1, 48, 48), 0, 5, dtype=jnp.int32)
    _check(x3, t3)

    # 4) bf16 score streamed in its native dtype
    x4 = jax.random.normal(k7, (1, 3, 64, 64), dtype=jnp.bfloat16)
    t4 = jax.random.randint(k8, (1, 64, 64), 0, 3, dtype=jnp.int32)
    _check(x4, t4)

    print("KERNEL_OK")
</pallas_src>

<mosaic_0001>
module attributes {stable_mosaic.version = 11 : i64} {
  func.func @kernel(%arg0: i32, %arg1: i32, %arg2: i32, %arg3: memref<1x4x2x128xf32, #tpu.memory_space<vmem>>, %arg4: memref<1x2x128xi32, #tpu.memory_space<vmem>>, %arg5: memref<1x1x2x128xf32, #tpu.memory_space<vmem>>) attributes {dimension_semantics = [#tpu.dimension_semantics<parallel>, #tpu.dimension_semantics<parallel>, #tpu.dimension_semantics<arbitrary>], iteration_bounds = array<i64: 2, 1, 1>, scalar_prefetch = 0 : i64, scratch_operands = 0 : i64, tpu.core_type = #tpu.core_type<tc>, window_params = [{transform_indices = @transform_0, window_bounds = array<i64: 1, 4, 2, 128>}, {transform_indices = @transform_1, window_bounds = array<i64: 1, 2, 128>}, {transform_indices = @transform_2, window_bounds = array<i64: 1, 1, 2, 128>}]} {
    %c0_i32 = arith.constant 0 : i32
    %0 = arith.cmpi eq, %arg2, %c0_i32 : i32
    %1 = arith.extui %0 : i1 to i32
    %c0_i32_0 = arith.constant 0 : i32
    %2 = arith.cmpi ne, %1, %c0_i32_0 : i32
    scf.if %2 {
      %cst_28 = arith.constant 0.000000e+00 : f32
      %36 = vector.broadcast %cst_28 : f32 to vector<1x1x2x128xf32>
      %c0_29 = arith.constant 0 : index
      %c0_30 = arith.constant 0 : index
      %c0_31 = arith.constant 0 : index
      %c0_32 = arith.constant 0 : index
      %37 = vector.load %arg5[%c0_29, %c0_30, %c0_31, %c0_32] : memref<1x1x2x128xf32, #tpu.memory_space<vmem>>, vector<1x1x2x128xf32>
      tpu.vector_store %arg5[%c0_29, %c0_30, %c0_31, %c0_32], %36 {strides = array<i32>} : memref<1x1x2x128xf32, #tpu.memory_space<vmem>>, vector<1x1x2x128xf32>,
    } else {
    }
    %cst = arith.constant 0.000000e+00 : f32
    %3 = vector.broadcast %cst : f32 to vector<2x128xf32>
    %c0 = arith.constant 0 : index
    %c0_1 = arith.constant 0 : index
    %c0_2 = arith.constant 0 : index
    %c0_3 = arith.constant 0 : index
    %4 = vector.load %arg3[%c0, %c0_1, %c0_2, %c0_3] : memref<1x4x2x128xf32, #tpu.memory_space<vmem>>, vector<1x1x2x128xf32>
    %5 = vector.shape_cast %4 : vector<1x1x2x128xf32> to vector<2x128xf32>
    %cst_4 = arith.constant 0.000000e+00 : f32
    %6 = vector.broadcast %cst_4 : f32 to vector<2x128xf32>
    %c0_5 = arith.constant 0 : index
    %c1 = arith.constant 1 : index
    %c0_6 = arith.constant 0 : index
    %c0_7 = arith.constant 0 : index
    %7 = vector.load %arg3[%c0_5, %c1, %c0_6, %c0_7] : memref<1x4x2x128xf32, #tpu.memory_space<vmem>>, vector<1x1x2x128xf32>
    %8 = vector.shape_cast %7 : vector<1x1x2x128xf32> to vector<2x128xf32>
    %9 = arith.cmpf ogt, %8, %5 : vector<2x128xf32>
    %10 = arith.select %9, %8, %5 : vector<2x128xi1>, vector<2x128xf32>
    %cst_8 = arith.constant 1.000000e+00 : f32
    %11 = vector.broadcast %cst_8 : f32 to vector<2x128xf32>
    %12 = arith.select %9, %11, %6 : vector<2x128xi1>, vector<2x128xf32>
    %c0_9 = arith.constant 0 : index
    %c2 = arith.constant 2 : index
    %c0_10 = arith.constant 0 : index
    %c0_11 = arith.constant 0 : index
    %13 = vector.load %arg3[%c0_9, %c2, %c0_10, %c0_11] : memref<1x4x2x128xf32, #tpu.memory_space<vmem>>, vector<1x1x2x128xf32>
    %14 = vector.shape_cast %13 : vector<1x1x2x128xf32> to vector<2x128xf32>
    %15 = arith.cmpf ogt, %14, %10 : vector<2x128xf32>
    %16 = arith.select %15, %14, %10 : vector<2x128xi1>, vector<2x128xf32>
    %cst_12 = arith.constant 2.000000e+00 : f32
    %17 = vector.broadcast %cst_12 : f32 to vector<2x128xf32>
    %18 = arith.select %15, %17, %12 : vector<2x128xi1>, vector<2x128xf32>
    %c0_13 = arith.constant 0 : index
    %c3 = arith.constant 3 : index
    %c0_14 = arith.constant 0 : index
    %c0_15 = arith.constant 0 : index
    %19 = vector.load %arg3[%c0_13, %c3, %c0_14, %c0_15] : memref<1x4x2x128xf32, #tpu.memory_space<vmem>>, vector<1x1x2x128xf32>
    %20 = vector.shape_cast %19 : vector<1x1x2x128xf32> to vector<2x128xf32>
    %21 = arith.cmpf ogt, %20, %16 : vector<2x128xf32>
    %cst_16 = arith.constant 3.000000e+00 : f32
    %22 = vector.broadcast %cst_16 : f32 to vector<2x128xf32>
    %23 = arith.select %21, %22, %18 : vector<2x128xi1>, vector<2x128xf32>
    %c0_17 = arith.constant 0 : index
    %c0_18 = arith.constant 0 : index
    %c0_19 = arith.constant 0 : index
    %24 = vector.load %arg4[%c0_17, %c0_18, %c0_19] : memref<1x2x128xi32, #tpu.memory_space<vmem>>, vector<1x2x128xi32>
    %25 = vector.shape_cast %24 : vector<1x2x128xi32> to vector<2x128xi32>
    %26 = arith.sitofp %25 : vector<2x128xi32> to vector<2x128xf32>
    %27 = arith.subf %23, %26 : vector<2x128xf32>
    %28 = math.absf %27 : vector<2x128xf32>
    %29 = arith.addf %3, %28 : vector<2x128xf32>
    %c0_20 = arith.constant 0 : index
    %c0_21 = arith.constant 0 : index
    %c0_22 = arith.constant 0 : index
    %c0_23 = arith.constant 0 : index
    %30 = vector.load %arg5[%c0_20, %c0_21, %c0_22, %c0_23] : memref<1x1x2x128xf32, #tpu.memory_space<vmem>>, vector<1x1x2x128xf32>
    %31 = vector.shape_cast %30 : vector<1x1x2x128xf32> to vector<2x128xf32>
    %32 = arith.addf %31, %29 : vector<2x128xf32>
    %c0_24 = arith.constant 0 : index
    %c0_25 = arith.constant 0 : index
    %c0_26 = arith.constant 0 : index
    %c0_27 = arith.constant 0 : index
    %33 = vector.load %arg5[%c0_24, %c0_25, %c0_26, %c0_27] : memref<1x1x2x128xf32, #tpu.memory_space<vmem>>, vector<1x1x2x128xf32>
    %34 = vector.shape_cast %33 : vector<1x1x2x128xf32> to vector<2x128xf32>
    %35 = vector.shape_cast %32 : vector<2x128xf32> to vector<1x1x2x128xf32>
    tpu.vector_store %arg5[%c0_24, %c0_25, %c0_26, %c0_27], %35 {strides = array<i32>} : memref<1x1x2x128xf32, #tpu.memory_space<vmem>>, vector<1x1x2x128xf32>,
    return
  }
  func.func @transform_0(%arg0: i32, %arg1: i32, %arg2: i32) -> (i32, i32, i32, i32) {
    %c1_i32 = arith.constant 1 : i32
    %0 = arith.muli %arg1, %c1_i32 : i32
    %1 = arith.addi %0, %arg2 : i32
    %c0_i32 = arith.constant 0 : i32
    %c0_i32_0 = arith.constant 0 : i32
    %c0_i32_1 = arith.constant 0 : i32
    return %arg0, %c0_i32, %1, %c0_i32_0 : i32, i32, i32, i32
  }
  func.func @transform_1(%arg0: i32, %arg1: i32, %arg2: i32) -> (i32, i32, i32) {
    %c1_i32 = arith.constant 1 : i32
    %0 = arith.muli %arg1, %c1_i32 : i32
    %1 = arith.addi %0, %arg2 : i32
    %c0_i32 = arith.constant 0 : i32
    %c0_i32_0 = arith.constant 0 : i32
    return %arg0, %1, %c0_i32 : i32, i32, i32
  }
  func.func @transform_2(%arg0: i32, %arg1: i32, %arg2: i32) -> (i32, i32, i32, i32) {
    %c0_i32 = arith.constant 0 : i32
    %c0_i32_0 = arith.constant 0 : i32
    %c0_i32_1 = arith.constant 0 : i32
    return %arg0, %arg1, %c0_i32, %c0_i32_0 : i32, i32, i32, i32
  }
}

</mosaic_0001>

<bundles_post_ra>
// kernel: class_class_loss.1
= control target key start
LH: loop header
LB: loop body
LE: loop exit
PB: predicated region body
PF: predicated region fallthrough
CT: control target
= control target key end

     0   :  { %s425_s9 = smov 0   ;;  %s427_s10 = smov 0   ;;  %s461_s0 = inlined_call_operand.vmem [shape: f32[2,4,2,128], index: 0, kind: input, shape index: {}]   ;;  %s462_s1 = inlined_call_operand.vmem [shape: s32[2,2,128], index: 1, kind: input, shape index: {}]   ;;  %s463_s2 = inlined_call_operand.vmem [shape: f32[2,1,2,128], index: 2, kind: output, shape index: {}]  }
   0x1   :  { %s429_s11 = smov 0  }
   0x2 LB: > { %s31_s12 = sadd.s32 1, %s403_s10  ;;  %p349_p0 = scmp.ge.s32.totalorder %s407_s11, 1  ;;  %s407_s11 = sphi %s429_s11, %s12_s11   ;;  %s403_s10 = sphi %s427_s10, %s465_s10   ;;  %s399_s9 = sphi %s425_s9, %s464_s9  }
   0x3   : > { %p33_p1 = scmp.ge.s32.totalorder %s31_s12, 2  ;;  %p160_p2 = scmp.lt.s32.totalorder %s407_s11, 3 }
   0x5   : > { %s467_s12 = smov (%p33_p1, %s31_s12), 0  ;;  %p161_p3 = pnand %p349_p0, %p160_p2 }
   0x6   : > { %p197_p4 = scmp.lt.s32.totalorder (!%p161_p3), %s399_s9, 1 }
   0x7   : > { %164 = sbr.rel (%p161_p3) target bundleno = 29 (0x1d), region = 28 }
   0xc   : > { %s469_s9 = smov (!%p197_p4, %s399_s9), 1  ;;  %v409_v3 = vmov 0.0  }
   0xd   : > { %s359_s13 = sshll.u32 %s469_s9, 3  ;;  %s352_s14 = sshll.u32 %s469_s9, 1 }
   0xe   : > { %s204_s17 = scalar_lea.vmem %s461_s0, %s359_s13  ;;  %s213_s20 = scalar_lea.vmem %s462_s1, %s352_s14 }
   0xf   : > { %s221_s23 = scalar_lea.vmem %s463_s2, %s352_s14  ;;  %v227_v0 = vld [vmem:[%s204_s17] sm:$0x3]  ;;  %v354_v1 = vld [vmem:[%s204_s17 + $0x2] sm:$0x3]  ;;  %v355_v2 = vld [vmem:[%s204_s17 + $0x4] sm:$0x3] }
  0x10   : > { %226 = vst [vmem:[%s221_s23] sm:$0x3] %v409_v3  ;;  %vm230_vm0 = vcmp.gt.f32.partialorder %v354_v1, %v227_v0  ;;  %v242_v4 = vld [vmem:[%s213_s20] sm:$0x3]  ;;  %v356_v7 = vld [vmem:[%s204_s17 + $0x6] sm:$0x3] }
  0x11   : > { %v231_v5 = vsel %vm230_vm0, %v354_v1, %v227_v0  ;;  %v232_v6 = vsel %vm230_vm0, 1.0, %v409_v3  ;;  %v243_v8 = vcvt.s32.f32 %v242_v4 }
  0x12   : > { %vm235_vm1 = vcmp.gt.f32.partialorder %v355_v2, %v231_v5 }
  0x13   : > { %v236_v9 = vsel %vm235_vm1, %v355_v2, %v231_v5  ;;  %v237_v10 = vsel %vm235_vm1, 2.0, %v232_v6 }
  0x14   : > { %vm240_vm2 = vcmp.gt.f32.partialorder %v356_v7, %v236_v9 }
  0x15   : > { %v241_v11 = vsel %vm240_vm2, 3.0, %v237_v10 }
  0x16   : > { %v244_v12 = vsub.f32 %v241_v11, %v243_v8 }
  0x17   : > { %v247_v13 = vld [vmem:[%s221_s23] sm:$0x3] }
  0x18   : > { %v245_v14 = vand.u32 2147483647, %v244_v12 }
  0x1a   : > { %v248_v15 = vadd.f32 %v247_v13, %v245_v14 }
  0x1c   : > { %249 = vst [vmem:[%s221_s23] sm:$0x3] %v248_v15 }
  0x1d PF: > { %s12_s11 = sadd.s32 1, %s407_s11   ;;  %s464_s9 = smov %s403_s10 }
  0x1e   : > { %p9_p5 = scmp.ge.s32.totalorder %s12_s11, 4   ;;  %s465_s10 = smov %s467_s12 }
  0x20   :  { %11 = sbr.rel (!%p9_p5) target bundleno = 2 (0x2), region = 68 }

</bundles_post_ra>
